<compile_context>
chip_gen: v6e
topology: v6e:2x2x1
jax: 0.10.0
libtpu: 0.0.40
codegen_flags: <defaults>
</compile_context>

<pallas_src>
import functools

import jax
import jax.numpy as jnp
from jax.experimental import pallas as pl
from jax.experimental.pallas import tpu as pltpu

_LANES = 128
_MAX_BLOCK_ROWS = 2048   # (2048, 128) f32 = 1 MiB per block, 2 MiB double-buffered
_NUM_SPLITS = 2          # leading "parallel" grid axis (v7x has 2 TensorCores)


def _partial_sum_kernel(x_ref, o_ref, *, blocks_per_split, num_blocks):
    c = pl.program_id(0)          # parallel split (one per TensorCore on v7x)
    i = pl.program_id(1)          # reduction step within the split

    @pl.when(i == 0)
    def _():
        o_ref[...] = jnp.zeros_like(o_ref)

    # Skip the clamped duplicate block when num_blocks doesn't split evenly.
    @pl.when(c * blocks_per_split + i < num_blocks)
    def _():
        blk = x_ref[...].astype(jnp.float32)
        # (block_rows, 128) -> (block_rows // 8, 8, 128); sum over the leading
        # axis is pure per-lane VPU adds into the resident (8, 128) output
        # block (the cheap layout-preserving reshape stays on (8,128) tiles).
        o_ref[...] += blk.reshape(-1, 8, _LANES).sum(axis=0)


def _zero_spread_loss_impl(x, _unused=None):
    n = x.size
    out_dtype = x.dtype if jnp.issubdtype(x.dtype, jnp.floating) else jnp.float32
    flat = x.reshape(-1)

    itemsize = jnp.dtype(x.dtype).itemsize
    row_align = 8 * max(1, 4 // itemsize)   # sublane multiple for this dtype (8/16/32)
    align_elems = row_align * _LANES

    if n < align_elems:
        # Smaller than one vreg-aligned tile: nothing to tile, plain JAX path.
        mean = jnp.mean(flat.astype(jnp.float32))
        return (2.0 * jax.nn.sigmoid(1.0 / jnp.abs(mean)) - 1.0).astype(out_dtype)

    # Block sizing: as large as possible up to _MAX_BLOCK_ROWS, kept a multiple
    # of the dtype's sublane alignment so the BlockSpec tiles cleanly.
    block_rows = min(_MAX_BLOCK_ROWS, (n // align_elems) * row_align)
    block_elems = block_rows * _LANES
    num_blocks = n // block_elems            # >= 1 here
    main_elems = num_blocks * block_elems

    main = flat[:main_elems].reshape(num_blocks * block_rows, _LANES)
    if main_elems < n:
        tail_sum = jnp.sum(flat[main_elems:].astype(jnp.float32))
    else:
        tail_sum = jnp.float32(0.0)

    blocks_per_split = pl.cdiv(num_blocks, _NUM_SPLITS)

    def x_index_map(c, i):
        # Clamp so the skipped last iteration of an uneven split stays in-bounds.
        return (jnp.minimum(c * blocks_per_split + i, num_blocks - 1), 0)

    kernel = functools.partial(
        _partial_sum_kernel,
        blocks_per_split=blocks_per_split,
        num_blocks=num_blocks,
    )

    partials = pl.pallas_call(
        kernel,
        out_shape=jax.ShapeDtypeStruct((_NUM_SPLITS * 8, _LANES), jnp.float32),
        grid_spec=pltpu.PrefetchScalarGridSpec(
            num_scalar_prefetch=0,
            grid=(_NUM_SPLITS, blocks_per_split),
            in_specs=[pl.BlockSpec((block_rows, _LANES), x_index_map)],
            out_specs=pl.BlockSpec((8, _LANES), lambda c, i: (c, 0)),
        ),
        compiler_params=pltpu.CompilerParams(
            dimension_semantics=("parallel", "arbitrary"),
        ),
    )(main)

    # Epilogue: one cross-lane reduce + trivial scalar transform in the wrapper.
    total = jnp.sum(partials) + tail_sum
    mean = total / jnp.float32(n)
    result = 2.0 * jax.nn.sigmoid(1.0 / jnp.abs(mean)) - 1.0
    return result.astype(out_dtype)


zero_spread_loss = jax.jit(_zero_spread_loss_impl)


if __name__ == "__main__":
    key = jax.random.PRNGKey(0)
    k1, k2 = jax.random.split(key)

    # Primary example: small NCHW activation. Offset by 0.5 so the mean is
    # O(0.5) and the sigmoid is exercised away from its saturation plateau.
    x = jax.random.normal(k1, (2, 4, 16, 16), dtype=jnp.float32) + 0.5
    dummy = jnp.zeros((2, 4, 16, 16), dtype=jnp.float32)  # the ignored `_` arg

    result = zero_spread_loss(x, dummy)
    jax.block_until_ready(result)
    ref = 2.0 * jax.nn.sigmoid(1.0 / jnp.abs(jnp.mean(x))) - 1.0
    assert result.shape == ()
    assert jnp.allclose(result, ref, atol=1e-6, rtol=1e-5), (result, ref)

    # Ragged shape: exercises the sub-block tail path and the uneven core split.
    y = jax.random.normal(k2, (2, 3, 33, 37), dtype=jnp.float32) + 0.5
    result2 = zero_spread_loss(y, None)
    jax.block_until_ready(result2)
    ref2 = 2.0 * jax.nn.sigmoid(1.0 / jnp.abs(jnp.mean(y))) - 1.0
    assert jnp.allclose(result2, ref2, atol=1e-6, rtol=1e-5), (result2, ref2)

    print("KERNEL_OK")
</pallas_src>

<mosaic_0001>
module attributes {stable_mosaic.version = 11 : i64} {
  func.func @_partial_sum_kernel(%arg0: i32, %arg1: i32, %arg2: memref<16x128xf32, #tpu.memory_space<vmem>>, %arg3: memref<8x128xf32, #tpu.memory_space<vmem>>) attributes {dimension_semantics = [#tpu.dimension_semantics<parallel>, #tpu.dimension_semantics<arbitrary>], iteration_bounds = array<i64: 2, 1>, scalar_prefetch = 0 : i64, scratch_operands = 0 : i64, tpu.core_type = #tpu.core_type<tc>, window_params = [{transform_indices = @transform_0, window_bounds = array<i64: 16, 128>}, {transform_indices = @transform_1, window_bounds = array<i64: 8, 128>}]} {
    %c0_i32 = arith.constant 0 : i32
    %0 = arith.cmpi eq, %arg1, %c0_i32 : i32
    %1 = arith.extui %0 : i1 to i32
    %c0_i32_0 = arith.constant 0 : i32
    %2 = arith.cmpi ne, %1, %c0_i32_0 : i32
    scf.if %2 {
      %cst = arith.constant 0.000000e+00 : f32
      %8 = vector.broadcast %cst : f32 to vector<8x128xf32>
      %c0 = arith.constant 0 : index
      %c0_3 = arith.constant 0 : index
      %9 = vector.load %arg3[%c0, %c0_3] : memref<8x128xf32, #tpu.memory_space<vmem>>, vector<8x128xf32>
      tpu.vector_store %arg3[%c0, %c0_3], %8 {strides = array<i32>} : memref<8x128xf32, #tpu.memory_space<vmem>>, vector<8x128xf32>,
    } else {
    }
    %c1_i32 = arith.constant 1 : i32
    %3 = arith.muli %arg0, %c1_i32 : i32
    %4 = arith.addi %3, %arg1 : i32
    %c1_i32_1 = arith.constant 1 : i32
    %5 = arith.cmpi slt, %4, %c1_i32_1 : i32
    %6 = arith.extui %5 : i1 to i32
    %c0_i32_2 = arith.constant 0 : i32
    %7 = arith.cmpi ne, %6, %c0_i32_2 : i32
    scf.if %7 {
      %c0 = arith.constant 0 : index
      %c0_3 = arith.constant 0 : index
      %8 = vector.load %arg2[%c0, %c0_3] : memref<16x128xf32, #tpu.memory_space<vmem>>, vector<16x128xf32>
      %c0_4 = arith.constant 0 : index
      %c0_5 = arith.constant 0 : index
      %9 = vector.load %arg3[%c0_4, %c0_5] : memref<8x128xf32, #tpu.memory_space<vmem>>, vector<8x128xf32>
      %10 = vector.shape_cast %8 : vector<16x128xf32> to vector<2x8x128xf32>
      %cst = arith.constant dense<0.000000e+00> : vector<8x128xf32>
      %11 = vector.multi_reduction <add>, %10, %cst [0] : vector<2x8x128xf32> to vector<8x128xf32>
      %12 = arith.addf %9, %11 : vector<8x128xf32>
      %c0_6 = arith.constant 0 : index
      %c0_7 = arith.constant 0 : index
      %13 = vector.load %arg3[%c0_6, %c0_7] : memref<8x128xf32, #tpu.memory_space<vmem>>, vector<8x128xf32>
      tpu.vector_store %arg3[%c0_6, %c0_7], %12 {strides = array<i32>} : memref<8x128xf32, #tpu.memory_space<vmem>>, vector<8x128xf32>,
    } else {
    }
    return
  }
  func.func @transform_0(%arg0: i32, %arg1: i32) -> (i32, i32) {
    %c1_i32 = arith.constant 1 : i32
    %0 = arith.muli %arg0, %c1_i32 : i32
    %1 = arith.addi %0, %arg1 : i32
    %c0_i32 = arith.constant 0 : i32
    %2 = arith.minsi %1, %c0_i32 : i32
    %c0_i32_0 = arith.constant 0 : i32
    %c0_i32_1 = arith.constant 0 : i32
    return %2, %c0_i32_0 : i32, i32
  }
  func.func @transform_1(%arg0: i32, %arg1: i32) -> (i32, i32) {
    %c0_i32 = arith.constant 0 : i32
    %c0_i32_0 = arith.constant 0 : i32
    return %arg0, %c0_i32 : i32, i32
  }
}

</mosaic_0001>

<bundles_post_ra>
// kernel: _zero_spread_loss_impl.1
= control target key start
LH: loop header
LB: loop body
LE: loop exit
PB: predicated region body
PF: predicated region fallthrough
CT: control target
= control target key end

     0   :  { %s298_s6 = smov 0   ;;  %s300_s7 = smov 0   ;;  %s328_s0 = inlined_call_operand.vmem [shape: f32[16,128], index: 0, kind: input, shape index: {}]   ;;  %s329_s1 = inlined_call_operand.vmem [shape: f32[16,128], index: 1, kind: output, shape index: {}]  }
   0x1   :  { %s302_s8 = smov 0  }
   0x2 LB: > { %s23_s9 = sadd.s32 1, %s281_s7  ;;  %p231_p0 = scmp.ge.s32.totalorder %s285_s8, 1  ;;  %s285_s8 = sphi %s302_s8, %s11_s8   ;;  %s281_s7 = sphi %s300_s7, %s331_s7   ;;  %s277_s6 = sphi %s298_s6, %s330_s6  }
   0x3   : > { %p25_p1 = scmp.ge.s32.totalorder %s23_s9, 2  ;;  %p112_p2 = scmp.lt.s32.totalorder %s285_s8, 3 }
   0x5   : > { %s333_s9 = smov (%p25_p1, %s23_s9), 0  ;;  %p113_p3 = pnand %p231_p0, %p112_p2 }
   0x6   : > { %p135_p4 = scmp.lt.s32.totalorder (!%p113_p3), %s277_s6, 0  ;;  %p146_p5 = scmp.lt.s32.totalorder (!%p113_p3), %s277_s6, 1 }
   0x7   : > { %116 = sbr.rel (%p113_p3) target bundleno = 28 (0x1c), region = 24  ;;  %p235_p7 = scmp.ge.s32.totalorder (!%p113_p3), %s277_s6, 1 }
   0xc   : > { %s136_s10 = scalar_select %p135_p4, %s277_s6, 0  ;;  %v287_v0 = vmov 0.0  }
   0xd   : > { %s147_s11 = scalar_select %p146_p5, %s277_s6, 1 }
   0xe   : > { %s232_s12 = sshll.u32 %s136_s10, 1 }
   0xf   : > { %p138_p6 = scmp.lt.s32.totalorder %s232_s12, 1  ;;  %s234_s13 = sshll.u32 %s147_s11, 3 }
  0x10   : > { %s149_s16 = scalar_lea.vmem %s329_s1, %s234_s13  ;;  %159 = sbr.rel (%p235_p7) target bundleno = 28 (0x1c), region = 32 }
  0x11   : > { %s335_s12 = smov (!%p138_p6, %s232_s12), 1  ;;  %154 = vst [vmem:[%s149_s16] sm:$0xff] %v287_v0 }
  0x12   : > { %s233_s17 = sshll.u32 %s335_s12, 3 }
  0x13   : > { %s141_s20 = scalar_lea.vmem %s328_s0, %s233_s17 }
  0x15   : > { %v160_v1 = vld [vmem:[%s141_s20] sm:$0xff]  ;;  %v161_v2 = vld [vmem:[%s141_s20 + $0x8] sm:$0xff] }
  0x16   : > { %v163_v4 = vadd.f32 %v161_v2, %v160_v1 }
  0x18   : > { %v162_v3 = vld [vmem:[%s149_s16] sm:$0xff] }
  0x19   : > { %v164_v5 = vadd.f32 %v163_v4, %v162_v3 }
  0x1b   : > { %165 = vst [vmem:[%s149_s16] sm:$0xff] %v164_v5 }
  0x1c PF: > { %s11_s8 = sadd.s32 1, %s285_s8   ;;  %s330_s6 = smov %s281_s7 }
  0x1d   : > { %p8_p8 = scmp.ge.s32.totalorder %s11_s8, 4   ;;  %s331_s7 = smov %s333_s9 }
  0x1f   :  { %10 = sbr.rel (!%p8_p8) target bundleno = 2 (0x2), region = 62 }

</bundles_post_ra>
